<compile_context>
chip_gen: v7x
topology: tpu7x:2x2x1
jax: 0.10.0
libtpu: 0.0.40
codegen_flags: <defaults>
</compile_context>

<pallas_src>
import jax
import jax.numpy as jnp
from jax import lax
from jax.experimental import pallas as pl
from jax.experimental.pallas import tpu as pltpu


def _ntxent_tile_kernel(zr_ref, zc_ref, zp_ref, out_ref, m_ref, l_ref):
    """One (row_block, col_block) step of the online-logsumexp NT-Xent loss.

    zr_ref: (T, D) bf16  normalized rows, pre-scaled by 1/temperature
    zc_ref: (T, D) bf16  normalized columns
    zp_ref: (T, D) bf16  normalized partner rows (cat([z_j, z_i]) order)
    out_ref: (T, 1) f32  per-row loss  lse_{j!=i} - pos_i
    m_ref, l_ref: (T, 1) f32 scratch (running max / running sum)
    """
    i = pl.program_id(0)
    j = pl.program_id(1)
    nj = pl.num_programs(1)

    @pl.when(j == 0)
    def _init():
        m_ref[...] = jnp.full(m_ref.shape, -jnp.inf, jnp.float32)
        l_ref[...] = jnp.zeros(l_ref.shape, jnp.float32)

    zr = zr_ref[...]                      # (T, D) bf16, already * (1/T_temp)
    zc = zc_ref[...]                      # (T, D) bf16

    # sim_tile[a, b] = <zn_row_a, zn_col_b> / temperature   (MXU, f32 acc)
    s = lax.dot_general(
        zr, zc, (((1,), (1,)), ((), ())),
        preferred_element_type=jnp.float32)                 # (T, T)

    # Online logsumexp update (m is a valid upper bound since it includes the
    # diagonal; the diagonal's exp contribution is removed below).
    m_prev = m_ref[...]
    m_new = jnp.maximum(m_prev, jnp.max(s, axis=-1, keepdims=True))
    alpha = jnp.exp(m_prev - m_new)
    p_sum = jnp.sum(jnp.exp(s - m_new), axis=-1, keepdims=True)
    m_ref[...] = m_new
    l_ref[...] = alpha * l_ref[...] + p_sum

    # Diagonal tiles only: subtract the self-similarity term exp(s_kk - m).
    # s_kk is recomputed as a cheap O(T*D) row-wise dot (same bf16 operands,
    # f32 products), so no N x N iota/mask is ever built.
    @pl.when(i == j)
    def _fix_diag():
        s_diag = jnp.sum(zr.astype(jnp.float32) * zc.astype(jnp.float32),
                         axis=-1, keepdims=True)            # (T, 1)
        l_ref[...] = l_ref[...] - jnp.exp(s_diag - m_ref[...])

    # Finalize this row block: per-row loss = logsumexp_{j!=i} - positive.
    @pl.when(j == nj - 1)
    def _finalize():
        lse = m_ref[...] + jnp.log(l_ref[...])              # (T, 1)
        pos = jnp.sum(zr.astype(jnp.float32) *
                      zp_ref[...].astype(jnp.float32),
                      axis=-1, keepdims=True)               # sim[i, partner]/T
        out_ref[...] = lse - pos


def _pick_tile(n: int, target: int) -> int:
    """Largest tile <= target that divides n and is a multiple of 8 (else n)."""
    if n <= target:
        return n
    t = (min(target, n) // 8) * 8
    while t >= 8:
        if n % t == 0:
            return t
        t -= 8
    return n


def ntxent_loss(z_i, z_j, temperature=0.5, tile=256):
    B, D = z_i.shape
    assert z_j.shape == (B, D)
    N = 2 * B

    # --- O(N*D) preprocessing in the wrapper (per perf review): concat,
    # --- row-normalize once, fold 1/temperature into the row operand, bf16.
    z = jnp.concatenate([z_i, z_j], axis=0).astype(jnp.float32)     # (N, D)
    norm = jnp.sqrt(jnp.sum(z * z, axis=-1, keepdims=True))
    zn = z / jnp.maximum(norm, 1e-8)
    zc = zn.astype(jnp.bfloat16)                                    # columns
    zr = (zn * jnp.float32(1.0 / temperature)).astype(jnp.bfloat16)  # rows / T
    zp = jnp.concatenate([zc[B:], zc[:B]], axis=0)                  # partners

    T = _pick_tile(N, tile)
    grid = (N // T, N // T)

    # Scoped-VMEM sizing: 3 double-buffered (T, D) bf16 inputs + a few (T, T)
    # f32 temporaries + tiny scratch/output; clamp to stay inside v7x's 64 MiB.
    est = 2 * 3 * (T * D * 2) + 8 * (T * T * 4) + 4 * T * 4 + (2 << 20)
    vmem_limit = int(min(max(est, 32 * 1024 * 1024), 48 * 1024 * 1024))

    per_row = pl.pallas_call(
        _ntxent_tile_kernel,
        out_shape=jax.ShapeDtypeStruct((N, 1), jnp.float32),
        grid_spec=pltpu.PrefetchScalarGridSpec(
            num_scalar_prefetch=0,
            grid=grid,
            in_specs=[
                pl.BlockSpec((T, D), lambda i, j: (i, 0)),   # zr (rows)
                pl.BlockSpec((T, D), lambda i, j: (j, 0)),   # zc (cols)
                pl.BlockSpec((T, D), lambda i, j: (i, 0)),   # zp (partners)
            ],
            out_specs=pl.BlockSpec((T, 1), lambda i, j: (i, 0)),
            scratch_shapes=[
                pltpu.VMEM((T, 1), jnp.float32),   # running max m
                pltpu.VMEM((T, 1), jnp.float32),   # running sum l
            ],
        ),
        compiler_params=pltpu.CompilerParams(
            dimension_semantics=("parallel", "arbitrary"),
            vmem_limit_bytes=vmem_limit,
        ),
    )(zr, zc, zp)

    return jnp.mean(per_row)


# ----------------------------- references ----------------------------------

def _ref_ntxent_exact(z_i, z_j, temperature=0.5):
    """Pure-JAX f32 reference mirroring the PyTorch forward."""
    B = z_i.shape[0]
    z = jnp.concatenate([z_i, z_j], axis=0).astype(jnp.float32)
    N = 2 * B
    zn = z / jnp.maximum(jnp.linalg.norm(z, axis=-1, keepdims=True), 1e-8)
    sim = (zn @ zn.T) / temperature
    idx = jnp.arange(N)
    pos = sim[idx, (idx + B) % N]
    sim_m = jnp.where(jnp.eye(N, dtype=bool), -jnp.inf, sim)
    lse = jax.scipy.special.logsumexp(sim_m, axis=-1)
    return jnp.mean(lse - pos)


def _ref_ntxent_bf16(z_i, z_j, temperature=0.5):
    """Reference with the same bf16-operand / f32-accumulate numerics as the kernel."""
    B = z_i.shape[0]
    z = jnp.concatenate([z_i, z_j], axis=0).astype(jnp.float32)
    N = 2 * B
    norm = jnp.sqrt(jnp.sum(z * z, axis=-1, keepdims=True))
    zn = z / jnp.maximum(norm, 1e-8)
    zc = zn.astype(jnp.bfloat16)
    zr = (zn * (1.0 / temperature)).astype(jnp.bfloat16)
    sim = jnp.dot(zr, zc.T, preferred_element_type=jnp.float32)
    zp = jnp.concatenate([zc[B:], zc[:B]], axis=0)
    pos = jnp.sum(zr.astype(jnp.float32) * zp.astype(jnp.float32), axis=-1)
    sim_m = jnp.where(jnp.eye(N, dtype=bool), -jnp.inf, sim)
    lse = jax.scipy.special.logsumexp(sim_m, axis=-1)
    return jnp.mean(lse - pos)


if __name__ == "__main__":
    key = jax.random.PRNGKey(0)

    # --- small test, single-tile path (B=4 -> N=8, D=32) ---
    temperature = 0.5
    k1, k2 = jax.random.split(key)
    z_i = jax.random.normal(k1, (4, 32), dtype=jnp.float32)
    z_j = jax.random.normal(k2, (4, 32), dtype=jnp.float32)

    loss = jax.block_until_ready(ntxent_loss(z_i, z_j, temperature))
    ref_b = jax.block_until_ready(_ref_ntxent_bf16(z_i, z_j, temperature))
    ref_e = jax.block_until_ready(_ref_ntxent_exact(z_i, z_j, temperature))
    assert jnp.allclose(loss, ref_b, rtol=2e-3, atol=2e-3), (loss, ref_b)
    assert jnp.allclose(loss, ref_e, rtol=5e-2, atol=5e-2), (loss, ref_e)

    # --- multi-tile path (B=64 -> N=128, D=128, tile=32 -> 4x4 grid) ---
    k3, k4 = jax.random.split(k2)
    z_i2 = jax.random.normal(k3, (64, 128), dtype=jnp.float32)
    z_j2 = jax.random.normal(k4, (64, 128), dtype=jnp.float32)

    loss2 = jax.block_until_ready(ntxent_loss(z_i2, z_j2, temperature, tile=32))
    ref2_b = jax.block_until_ready(_ref_ntxent_bf16(z_i2, z_j2, temperature))
    ref2_e = jax.block_until_ready(_ref_ntxent_exact(z_i2, z_j2, temperature))
    assert jnp.allclose(loss2, ref2_b, rtol=2e-3, atol=2e-3), (loss2, ref2_b)
    assert jnp.allclose(loss2, ref2_e, rtol=5e-2, atol=5e-2), (loss2, ref2_e)

    print("KERNEL_OK")
</pallas_src>

<mosaic_0001>
module attributes {stable_mosaic.version = 11 : i64} {
  func.func @_ntxent_tile_kernel(%arg0: i32, %arg1: i32, %arg2: memref<8x32xbf16, #tpu.memory_space<vmem>>, %arg3: memref<8x32xbf16, #tpu.memory_space<vmem>>, %arg4: memref<8x32xbf16, #tpu.memory_space<vmem>>, %arg5: memref<8x1xf32, #tpu.memory_space<vmem>>, %arg6: memref<8x1xf32, #tpu.memory_space<vmem>>, %arg7: memref<8x1xf32, #tpu.memory_space<vmem>>) attributes {dimension_semantics = [#tpu.dimension_semantics<parallel>, #tpu.dimension_semantics<arbitrary>], iteration_bounds = array<i64: 1, 1>, scalar_prefetch = 0 : i64, scratch_operands = 2 : i64, tpu.core_type = #tpu.core_type<tc>, window_params = [{transform_indices = @transform_0, window_bounds = array<i64: 8, 32>}, {transform_indices = @transform_1, window_bounds = array<i64: 8, 32>}, {transform_indices = @transform_2, window_bounds = array<i64: 8, 32>}, {transform_indices = @transform_3, window_bounds = array<i64: 8, 1>}]} {
    %c0_i32 = arith.constant 0 : i32
    %0 = arith.cmpi eq, %arg1, %c0_i32 : i32
    %1 = arith.extui %0 : i1 to i32
    %c0_i32_0 = arith.constant 0 : i32
    %2 = arith.cmpi ne, %1, %c0_i32_0 : i32
    scf.if %2 {
      %cst_17 = arith.constant 0xFF800000 : f32
      %28 = vector.broadcast %cst_17 : f32 to vector<8x1xf32>
      %c0_18 = arith.constant 0 : index
      %c0_19 = arith.constant 0 : index
      %29 = vector.load %arg6[%c0_18, %c0_19] : memref<8x1xf32, #tpu.memory_space<vmem>>, vector<8x1xf32>
      tpu.vector_store %arg6[%c0_18, %c0_19], %28 {strides = array<i32>} : memref<8x1xf32, #tpu.memory_space<vmem>>, vector<8x1xf32>,
      %cst_20 = arith.constant 0.000000e+00 : f32
      %30 = vector.broadcast %cst_20 : f32 to vector<8x1xf32>
      %c0_21 = arith.constant 0 : index
      %c0_22 = arith.constant 0 : index
      %31 = vector.load %arg7[%c0_21, %c0_22] : memref<8x1xf32, #tpu.memory_space<vmem>>, vector<8x1xf32>
      tpu.vector_store %arg7[%c0_21, %c0_22], %30 {strides = array<i32>} : memref<8x1xf32, #tpu.memory_space<vmem>>, vector<8x1xf32>,
    } else {
    }
    %c0 = arith.constant 0 : index
    %c0_1 = arith.constant 0 : index
    %3 = vector.load %arg2[%c0, %c0_1] : memref<8x32xbf16, #tpu.memory_space<vmem>>, vector<8x32xbf16>
    %c0_2 = arith.constant 0 : index
    %c0_3 = arith.constant 0 : index
    %4 = vector.load %arg3[%c0_2, %c0_3] : memref<8x32xbf16, #tpu.memory_space<vmem>>, vector<8x32xbf16>
    %cst = arith.constant dense<0.000000e+00> : vector<8x8xf32>
    %5 = tpu.matmul %3, %4, %cst {dimension_numbers = #tpu.dot_dimension_numbers<[1], [1], [0], [0], [0, 0, 1, 0], [], []>} : vector<8x32xbf16>, vector<8x32xbf16>, vector<8x8xf32> -> vector<8x8xf32>
    %c0_4 = arith.constant 0 : index
    %c0_5 = arith.constant 0 : index
    %6 = vector.load %arg6[%c0_4, %c0_5] : memref<8x1xf32, #tpu.memory_space<vmem>>, vector<8x1xf32>
    %cst_6 = arith.constant dense<0xFF800000> : vector<8xf32>
    %7 = vector.multi_reduction <maximumf>, %5, %cst_6 [1] : vector<8x8xf32> to vector<8xf32>
    %8 = vector.shape_cast %7 : vector<8xf32> to vector<8x1xf32>
    %9 = arith.maximumf %6, %8 : vector<8x1xf32>
    %10 = arith.subf %6, %9 : vector<8x1xf32>
    %11 = math.exp %10 : vector<8x1xf32>
    %12 = vector.broadcast %9 : vector<8x1xf32> to vector<8x8xf32>
    %13 = arith.subf %5, %12 : vector<8x8xf32>
    %14 = math.exp %13 : vector<8x8xf32>
    %cst_7 = arith.constant dense<0.000000e+00> : vector<8xf32>
    %15 = vector.multi_reduction <add>, %14, %cst_7 [1] : vector<8x8xf32> to vector<8xf32>
    %16 = vector.shape_cast %15 : vector<8xf32> to vector<8x1xf32>
    %c0_8 = arith.constant 0 : index
    %c0_9 = arith.constant 0 : index
    %17 = vector.load %arg6[%c0_8, %c0_9] : memref<8x1xf32, #tpu.memory_space<vmem>>, vector<8x1xf32>
    tpu.vector_store %arg6[%c0_8, %c0_9], %9 {strides = array<i32>} : memref<8x1xf32, #tpu.memory_space<vmem>>, vector<8x1xf32>,
    %c0_10 = arith.constant 0 : index
    %c0_11 = arith.constant 0 : index
    %18 = vector.load %arg7[%c0_10, %c0_11] : memref<8x1xf32, #tpu.memory_space<vmem>>, vector<8x1xf32>
    %19 = arith.mulf %11, %18 : vector<8x1xf32>
    %20 = arith.addf %19, %16 : vector<8x1xf32>
    %c0_12 = arith.constant 0 : index
    %c0_13 = arith.constant 0 : index
    %21 = vector.load %arg7[%c0_12, %c0_13] : memref<8x1xf32, #tpu.memory_space<vmem>>, vector<8x1xf32>
    tpu.vector_store %arg7[%c0_12, %c0_13], %20 {strides = array<i32>} : memref<8x1xf32, #tpu.memory_space<vmem>>, vector<8x1xf32>,
    %22 = arith.cmpi eq, %arg0, %arg1 : i32
    %23 = arith.extui %22 : i1 to i32
    %c0_i32_14 = arith.constant 0 : i32
    %24 = arith.cmpi ne, %23, %c0_i32_14 : i32
    scf.if %24 {
      %28 = arith.extf %3 : vector<8x32xbf16> to vector<8x32xf32>
      %29 = arith.extf %4 : vector<8x32xbf16> to vector<8x32xf32>
      %30 = arith.mulf %28, %29 : vector<8x32xf32>
      %cst_17 = arith.constant dense<0.000000e+00> : vector<8xf32>
      %31 = vector.multi_reduction <add>, %30, %cst_17 [1] : vector<8x32xf32> to vector<8xf32>
      %32 = vector.shape_cast %31 : vector<8xf32> to vector<8x1xf32>
      %c0_18 = arith.constant 0 : index
      %c0_19 = arith.constant 0 : index
      %33 = vector.load %arg7[%c0_18, %c0_19] : memref<8x1xf32, #tpu.memory_space<vmem>>, vector<8x1xf32>
      %c0_20 = arith.constant 0 : index
      %c0_21 = arith.constant 0 : index
      %34 = vector.load %arg6[%c0_20, %c0_21] : memref<8x1xf32, #tpu.memory_space<vmem>>, vector<8x1xf32>
      %35 = arith.subf %32, %34 : vector<8x1xf32>
      %36 = math.exp %35 : vector<8x1xf32>
      %37 = arith.subf %33, %36 : vector<8x1xf32>
      %c0_22 = arith.constant 0 : index
      %c0_23 = arith.constant 0 : index
      %38 = vector.load %arg7[%c0_22, %c0_23] : memref<8x1xf32, #tpu.memory_space<vmem>>, vector<8x1xf32>
      tpu.vector_store %arg7[%c0_22, %c0_23], %37 {strides = array<i32>} : memref<8x1xf32, #tpu.memory_space<vmem>>, vector<8x1xf32>,
    } else {
    }
    %c0_i32_15 = arith.constant 0 : i32
    %25 = arith.cmpi eq, %arg1, %c0_i32_15 : i32
    %26 = arith.extui %25 : i1 to i32
    %c0_i32_16 = arith.constant 0 : i32
    %27 = arith.cmpi ne, %26, %c0_i32_16 : i32
    scf.if %27 {
      %c0_17 = arith.constant 0 : index
      %c0_18 = arith.constant 0 : index
      %28 = vector.load %arg6[%c0_17, %c0_18] : memref<8x1xf32, #tpu.memory_space<vmem>>, vector<8x1xf32>
      %c0_19 = arith.constant 0 : index
      %c0_20 = arith.constant 0 : index
      %29 = vector.load %arg7[%c0_19, %c0_20] : memref<8x1xf32, #tpu.memory_space<vmem>>, vector<8x1xf32>
      %30 = math.log %29 : vector<8x1xf32>
      %31 = arith.addf %28, %30 : vector<8x1xf32>
      %32 = arith.extf %3 : vector<8x32xbf16> to vector<8x32xf32>
      %c0_21 = arith.constant 0 : index
      %c0_22 = arith.constant 0 : index
      %33 = vector.load %arg4[%c0_21, %c0_22] : memref<8x32xbf16, #tpu.memory_space<vmem>>, vector<8x32xbf16>
      %34 = arith.extf %33 : vector<8x32xbf16> to vector<8x32xf32>
      %35 = arith.mulf %32, %34 : vector<8x32xf32>
      %cst_23 = arith.constant dense<0.000000e+00> : vector<8xf32>
      %36 = vector.multi_reduction <add>, %35, %cst_23 [1] : vector<8x32xf32> to vector<8xf32>
      %37 = vector.shape_cast %36 : vector<8xf32> to vector<8x1xf32>
      %38 = arith.subf %31, %37 : vector<8x1xf32>
      %c0_24 = arith.constant 0 : index
      %c0_25 = arith.constant 0 : index
      %39 = vector.load %arg5[%c0_24, %c0_25] : memref<8x1xf32, #tpu.memory_space<vmem>>, vector<8x1xf32>
      tpu.vector_store %arg5[%c0_24, %c0_25], %38 {strides = array<i32>} : memref<8x1xf32, #tpu.memory_space<vmem>>, vector<8x1xf32>,
    } else {
    }
    return
  }
  func.func @transform_0(%arg0: i32, %arg1: i32) -> (i32, i32) {
    %c0_i32 = arith.constant 0 : i32
    %c0_i32_0 = arith.constant 0 : i32
    return %arg0, %c0_i32 : i32, i32
  }
  func.func @transform_1(%arg0: i32, %arg1: i32) -> (i32, i32) {
    %c0_i32 = arith.constant 0 : i32
    %c0_i32_0 = arith.constant 0 : i32
    return %arg1, %c0_i32 : i32, i32
  }
  func.func @transform_2(%arg0: i32, %arg1: i32) -> (i32, i32) {
    %c0_i32 = arith.constant 0 : i32
    %c0_i32_0 = arith.constant 0 : i32
    return %arg0, %c0_i32 : i32, i32
  }
  func.func @transform_3(%arg0: i32, %arg1: i32) -> (i32, i32) {
    %c0_i32 = arith.constant 0 : i32
    %c0_i32_0 = arith.constant 0 : i32
    return %arg0, %c0_i32 : i32, i32
  }
}

</mosaic_0001>

<bundles_post_ra>
// kernel: tpu_custom_call.1
= control target key start
LH: loop header
LB: loop body
LE: loop exit
PB: predicated region body
PF: predicated region fallthrough
CT: control target
= control target key end

     0   :  { %8 = vsyncpa [#allocation5], 0  ;;  %s301_s0 = inlined_call_operand.hbm [shape: bf16[8,32], index: 0, kind: input, shape index: {}]   ;;  %s302_s1 = inlined_call_operand.hbm [shape: bf16[8,32], index: 1, kind: input, shape index: {}]   ;;  %s303_s2 = inlined_call_operand.vmem [shape: bf16[8,32], index: 2, kind: input, shape index: {}]   ;;  %s304_s3 = inlined_call_operand.vmem [shape: f32[8,1], index: 3, kind: output, shape index: {}]  }
   0x1   :  { %9 = vsyncpa [#allocation7], 0  ;;  %s233_s12 = smov [#allocation4]   ;;  %s234_s14 = smov [#allocation6]  }
   0x2   :  { %s16_s13 = sshll.u32 %s233_s12, 4  ;;  %s26_s15 = sshll.u32 %s234_s14, 4  ;;  %s17_s13 = int_to_ptr.vmem [resolvable:$true] %s16_s13  ;;  %s27_s15 = int_to_ptr.vmem [resolvable:$true] %s26_s15 }
   0x3   :  { %s185_s18 = scalar_lea.hbm %s301_s0, 64 }
   0x4   :  { %p186_p0 = scmp.ne.s32.totalorder %s301_s0, %s185_s18  ;;  %p189_p1 = scmp.lt.u32.totalorder %s185_s18, %s301_s0 }
   0x6   :  { %p191_p2 = pnand %p189_p1, %p186_p0 }
   0x8   :  { %194 = shalt.err (!%p191_p2)
}
   0x9   :  { %s195_s23 = scalar_lea.vmem %s17_s13, 64  ;;  %p200_p4 = scmp.lt.s32.totalorder %s17_s13, %s17_s13 }
   0xa   :  { %p196_p3 = scmp.ne.s32.totalorder %s17_s13, %s195_s23  ;;  %p201_p5 = scmp.lt.s32.totalorder %s195_s23, %s195_s23 }
   0xc   :  { %p202_p6 = por %p201_p5, %p200_p4 }
   0xe   :  { %p203_p7 = pnand %p202_p6, %p196_p3 }
  0x10   :  { %206 = shalt.err (!%p203_p7)
}
  0x11   :  { %19 = dma.hbm_to_vmem [thread:$0]  %s301_s0, 64, %s17_s13, [#allocation5]  }
  0x12   :  { %s207_s28 = scalar_lea.hbm %s302_s1, 64 }
  0x13   :  { %p208_p8 = scmp.ne.s32.totalorder %s302_s1, %s207_s28  ;;  %p211_p9 = scmp.lt.u32.totalorder %s207_s28, %s302_s1 }
  0x15   :  { %p213_p10 = pnand %p211_p9, %p208_p8 }
  0x17   :  { %216 = shalt.err (!%p213_p10)
}
  0x18   :  { %s217_s6 = scalar_lea.vmem %s27_s15, 64  ;;  %p222_p12 = scmp.lt.s32.totalorder %s27_s15, %s27_s15 }
  0x19   :  { %p218_p11 = scmp.ne.s32.totalorder %s27_s15, %s217_s6  ;;  %p223_p13 = scmp.lt.s32.totalorder %s217_s6, %s217_s6 }
  0x1b   :  { %p224_p0 = por %p223_p13, %p222_p12 }
  0x1d   :  { %p225_p1 = pnand %p224_p0, %p218_p11 }
  0x1f   :  { %228 = shalt.err (!%p225_p1)
}
  0x20   :  { %29 = dma.hbm_to_vmem [thread:$0]  %s302_s1, 64, %s27_s15, [#allocation7]  }
  0x21   :  { %229 = dma.done.wait [#allocation5], 64  }
  0x22   :  { %230 = vsyncadd [#allocation5], 4294967232 }
  0x23   :  { %231 = dma.done.wait [#allocation7], 64  }
  0x24   :  { %232 = vsyncadd [#allocation7], 4294967232  ;;  %vm43_vm0 = vcmask 7168   ;;  %v235_v0 = vmov 0.0   ;;  %vm236_vm1 = vmmov 0   ;;  %vm48_vm2 = vcmask 261120  }
  0x25   :  { %45 = vst.msk [vmem:[#allocation3] sm:$0xff] %vm43_vm0, %v235_v0  ;;  %164 = vmatprep.subr.bf16.mxu0 %v235_v0  ;;  %166 = vmatprep.mubr.msk.bf16.mxu0 %vm236_vm1, %v235_v0  ;;  %v47_v1 = vld [vmem:[#allocation6] sm:$0xf]  ;;  %v46_v3 = vld [vmem:[#allocation4] sm:$0xf]  ;;  %v237_v6 = vmov -inf  }
  0x26   :  { %v53_v2 = vsel %vm48_vm2, %v47_v1, 0  ;;  %v126_v4 = vunpack.c.l.bf16 %v47_v1  ;;  %v125_v5 = vunpack.c.l.bf16 %v46_v3  ;;  %44 = vst.msk [vmem:[#allocation2] sm:$0xff] %vm43_vm0, %v237_v6  ;;  %vm96_vm3 = vcmask 64512   ;;  %v147_v22 = vld [vmem:[%s303_s2] sm:$0xf] }
  0x27   :  { %165 = vmatpush3.bf16.xpose.msra.mxu0 %v53_v2  ;;  %v238_v14 = vmov 0   ;;  %v148_v23 = vunpack.c.l.bf16 %v147_v22 }
  0x28   :  { %v127_v7 = vmul.f32 %v126_v4, %v125_v5  ;;  %176 = vset.pattern.permute.xlu0 %v238_v14 }
  0x29   :  { %v149_v24 = vmul.f32 %v148_v23, %v125_v5 }
  0x2a   :  { %v128_v8 = vsel %vm48_vm2, %v127_v7, 0.0 }
  0x2b   :  { %129 = vadd.xlane.f32.xlu1 %v128_v8  ;;  %v150_v27 = vsel %vm48_vm2, %v149_v24, 0.0 }
  0x2c   :  { %v117_v34 = vld [vmem:[#allocation3] sm:$0xff] }
  0x2d   :  { %v95_v15 = vld [vmem:[#allocation2] sm:$0xff] }
  0x2e   :  { %167 = vmatmul.mubr.msk.bf16.vlgmr.msra.gmra.mrb[0].mxu0 %vm48_vm2, %v46_v3 }
  0xb8   :  { %v130_v29 = vpop.xlane.xlu1 %129 }
 0x101   :  { %v89_v9 = vpop.f32.mrb[0].mxu0 }
 0x102   :  { %v168_v10 = vpop.f32.mrb[1].mxu0  ;;  %v97_v11 = vsel %vm96_vm3, %v89_v9, -inf }
 0x103   :  { %98 = vmax.xlane.f32.xlu0 %v97_v11  ;;  %v92_v12 = vpop.f32.mrb[2].mxu0 }
 0x104   :  { %v169_v13 = vpop.f32.mrb[3].mxu0 }
 0x190   :  { %v99_v16 = vpop.xlane.xlu0 %98 }
 0x191   :  { %v100_v17 = vmax.f32 %v95_v15, %v99_v16 }
 0x193   :  { %v101_v18 = vsub.f32 %v95_v15, %v100_v17  ;;  %116 = vst.msk [vmem:[#allocation2] sm:$0xff] %vm43_vm0, %v100_v17  ;;  %106 = vperm.xlu0 %176, %v100_v17  }
 0x195   :  { %v102_v28 = vmul.f32 1.442695, %v101_v18 }
 0x19a   :  { %v132_v30 = vld [vmem:[#allocation2] sm:$0xff] }
 0x19b   :  { %v133_v31 = vsub.f32 %v130_v29, %v132_v30 }
 0x19d   :  { %v134_v33 = vmul.f32 1.442695, %v133_v31 }
 0x212   :  { %v107_v19 = vpop.permute.xlu0 %106 }
 0x213   :  { %v109_v20 = vsub.f32 %v89_v9, %v107_v19 }
 0x215   :  { %v110_v21 = vmul.f32 1.442695, %v109_v20 }
 0x217   :  { %177 = vpow2.f32 %v110_v21 }
 0x218   :  { %179 = vpow2.f32 %v102_v28 }
 0x219   :  { %181 = vpow2.f32 %v134_v33 }
 0x221   :  { %v178_v25 = vpop.eup %177 }
 0x222   :  { %v112_v26 = vsel %vm96_vm3, %v178_v25, 0.0  ;;  %v180_v32 = vpop.eup %179 }
 0x223   :  { %113 = vadd.xlane.f32.xlu1 %v112_v26  ;;  %v118_v35 = vmul.f32 %v180_v32, %v117_v34  ;;  %v182_v38 = vpop.eup %181 }
 0x227   :  { %151 = vadd.xlane.f32.xlu1 %v150_v27 }
 0x2b0   :  { %v114_v36 = vpop.xlane.xlu1 %113 }
 0x2b1   :  { %v119_v37 = vadd.f32 %v118_v35, %v114_v36 }
 0x2b3   :  { %120 = vst.msk [vmem:[#allocation3] sm:$0xff] %vm43_vm0, %v119_v37 }
 0x2b4   :  { %v152_v44 = vpop.xlane.xlu1 %151 }
 0x2ba   :  { %v131_v39 = vld [vmem:[#allocation3] sm:$0xff] }
 0x2bb   :  { %v136_v40 = vsub.f32 %v131_v39, %v182_v38 }
 0x2bd   :  { %137 = vst.msk [vmem:[#allocation3] sm:$0xff] %vm43_vm0, %v136_v40 }
 0x2c4   :  { %v142_v41 = vld [vmem:[#allocation3] sm:$0xff] }
 0x2c5   :  { %183 = vlog2.f32 %v142_v41 }
 0x2cf   :  { %v184_v42 = vpop.eup %183 }
 0x2d0   :  { %v144_v43 = vmul.f32 0.6931472, %v184_v42 }
 0x2d2   :  { %v145_v45 = vadd.f32 %v144_v43, %v132_v30 }
 0x2d4   :  { %v153_v46 = vsub.f32 %v145_v45, %v152_v44 }
 0x2d6   :  { %154 = vst.msk [vmem:[%s304_s3] sm:$0xff] %vm43_vm0, %v153_v46 }
 0x2d7   :  { %159 = vsyncpa [#allocation5], 1 }
 0x2d8   :  { %160 = vsyncpa [#allocation7], 1 }

</bundles_post_ra>
